<compile_context>
chip_gen: v7x
topology: tpu7x:2x2x1
jax: 0.10.0
libtpu: 0.0.40
codegen_flags: <defaults>
</compile_context>

<pallas_src>
import functools
import math

import jax
import jax.numpy as jnp
from jax.experimental import pallas as pl
from jax.experimental.pallas import tpu as pltpu


def _round_up(x, m):
    return ((x + m - 1) // m) * m


def _vmem_limit(need_bytes):
    # Explicit scoped-VMEM limit (review: don't rely on per-generation defaults).
    return int(min(max(need_bytes + (8 << 20), 24 << 20), 56 << 20))


def _pick_tile(n, cap, align):
    """Largest tile <= cap that divides n and is a multiple of align (or n itself)."""
    if n <= cap:
        return n
    start = cap - (cap % align)
    for t in range(start, align - 1, -align):
        if n % t == 0:
            return t
    return n


def _seq_tile(n, cap):
    """Sequence tile: prefer 128-multiples, then 8-multiples, that divide n."""
    if n <= cap:
        return n
    for align in (128, 8):
        start = cap - (cap % align)
        for t in range(start, align - 1, -align):
            if n % t == 0:
                return t
    return n


# ---------------------------------------------------------------------------
# Linear:  y = x @ W + b   (row-tiled x, column-tiled W resident per col tile)
# ---------------------------------------------------------------------------
def _linear_kernel(x_ref, w_ref, b_ref, o_ref):
    acc = jnp.dot(x_ref[...], w_ref[...], preferred_element_type=jnp.float32)
    o_ref[...] = (acc + b_ref[...].astype(jnp.float32)).astype(o_ref.dtype)


def linear_pallas(x2, w, b, *, out_dtype=None, tm_pref=512, tn_pref=2304):
    """x2: (M, Cin), w: (Cin, Cout), b: (Cout,) f32 -> (M, Cout)."""
    M, Cin = x2.shape
    Cout = w.shape[1]
    out_dtype = out_dtype or x2.dtype

    tm = _pick_tile(M, tm_pref, 8)        # big row tiles amortize grid overhead
    tn = _pick_tile(Cout, tn_pref, 128)   # lane-dense, 128-aligned column tiles

    isz = jnp.dtype(x2.dtype).itemsize
    wsz = jnp.dtype(w.dtype).itemsize
    osz = jnp.dtype(out_dtype).itemsize
    need = 2 * (tm * Cin * isz + Cin * tn * wsz + tn * 4 + tm * tn * osz)

    out = pl.pallas_call(
        _linear_kernel,
        out_shape=jax.ShapeDtypeStruct((M, Cout), out_dtype),
        grid_spec=pltpu.PrefetchScalarGridSpec(
            num_scalar_prefetch=0,
            # rows innermost: W column tile stays resident, x row tiles stream.
            grid=(Cout // tn, M // tm),
            in_specs=[
                pl.BlockSpec((tm, Cin), lambda j, i: (i, 0)),   # x row tile
                pl.BlockSpec((Cin, tn), lambda j, i: (0, j)),   # W column tile
                pl.BlockSpec((1, tn), lambda j, i: (0, j)),     # bias (f32)
            ],
            out_specs=pl.BlockSpec((tm, tn), lambda j, i: (i, j)),
        ),
        compiler_params=pltpu.CompilerParams(
            dimension_semantics=("parallel", "parallel"),
            vmem_limit_bytes=_vmem_limit(need)),
    )(x2, w, b.reshape(1, Cout))
    return out


# ---------------------------------------------------------------------------
# Fused multi-head attention over the (B, Np, 3C) qkv tensor (flash-style).
# Heads are handled in-kernel via 64-lane column slices -> no head transposes.
# ---------------------------------------------------------------------------
def _mha_kernel(q_ref, k_ref, v_ref, o_ref, m_sc, l_sc, acc_sc, *,
                num_heads, head_dim, n_real, block_k, needs_mask):
    ki = pl.program_id(2)

    @pl.when(ki == 0)
    def _init():
        m_sc[...] = jnp.full_like(m_sc, -jnp.inf)
        l_sc[...] = jnp.zeros_like(l_sc)
        acc_sc[...] = jnp.zeros_like(acc_sc)

    tq = q_ref.shape[0]
    tk = k_ref.shape[0]
    D = head_dim

    if needs_mask:
        # Mask keys that belong to sequence padding (shared by all heads).
        col = jax.lax.broadcasted_iota(jnp.int32, (tq, tk), 1) + ki * block_k
        kv_valid = col < n_real

    for h in range(num_heads):
        lo, hi = h * D, (h + 1) * D
        # Softmax scale is pre-folded into W_q, so q needs no scaling here.
        q_h = q_ref[:, lo:hi]                                  # (tq, D)
        k_h = k_ref[:, lo:hi]                                  # (tk, D)
        s = jax.lax.dot_general(q_h, k_h, (((1,), (1,)), ((), ())),
                                preferred_element_type=jnp.float32)  # (tq, tk)
        if needs_mask:
            s = jnp.where(kv_valid, s, -jnp.inf)

        m_prev = m_sc[h]                                       # (tq, 1) f32
        m_new = jnp.maximum(m_prev, jnp.max(s, axis=-1, keepdims=True))
        alpha = jnp.exp(m_prev - m_new)
        p = jnp.exp(s - m_new)
        l_sc[h] = alpha * l_sc[h] + jnp.sum(p, axis=-1, keepdims=True)
        acc_sc[h] = alpha * acc_sc[h] + jnp.dot(
            p.astype(v_ref.dtype), v_ref[:, lo:hi],
            preferred_element_type=jnp.float32)
        m_sc[h] = m_new

    @pl.when(ki == pl.num_programs(2) - 1)
    def _fin():
        for h in range(num_heads):
            lo, hi = h * D, (h + 1) * D
            inv_l = pl.reciprocal(l_sc[h], approx=True)        # EUP, not VALU divide
            o_ref[:, lo:hi] = (acc_sc[h] * inv_l).astype(o_ref.dtype)


def fused_mha_pallas(qkv, *, num_heads, n_real):
    """qkv: (B, Np, 3C) with columns [q | k | v], each C = num_heads * D.

    Returns the head-merged attention output (B, Np, C) in the same row layout.
    """
    B, Np, C3 = qkv.shape
    C = C3 // 3
    assert C * 3 == C3 and C % num_heads == 0
    # TODO(synk): general C not divisible by 128 would need full-3C column
    # blocks + in-kernel slot offsets; timesformer dims (768, demo 128) are fine.
    assert C % 128 == 0, "fused q/k/v column BlockSpecs require C % 128 == 0"
    D = C // num_heads

    tq = _seq_tile(Np, 256)
    tk = _seq_tile(Np, 512)
    needs_mask = (n_real != Np)

    isz = jnp.dtype(qkv.dtype).itemsize
    need = 2 * (2 * tq * C + 2 * tk * C) * isz \
        + num_heads * tq * (2 * 128 + D) * 4

    kernel = functools.partial(
        _mha_kernel, num_heads=num_heads, head_dim=D, n_real=n_real,
        block_k=tk, needs_mask=needs_mask)

    return pl.pallas_call(
        kernel,
        out_shape=jax.ShapeDtypeStruct((B, Np, C), qkv.dtype),
        grid_spec=pltpu.PrefetchScalarGridSpec(
            num_scalar_prefetch=0,
            grid=(B, Np // tq, Np // tk),
            in_specs=[
                # Same qkv array three times; column block index picks the slot.
                pl.BlockSpec((None, tq, C), lambda b, qi, ki: (b, qi, 0)),  # q rows
                pl.BlockSpec((None, tk, C), lambda b, qi, ki: (b, ki, 1)),  # k rows
                pl.BlockSpec((None, tk, C), lambda b, qi, ki: (b, ki, 2)),  # v rows
            ],
            out_specs=pl.BlockSpec((None, tq, C), lambda b, qi, ki: (b, qi, 0)),
            scratch_shapes=[
                pltpu.VMEM((num_heads, tq, 1), jnp.float32),   # running max m
                pltpu.VMEM((num_heads, tq, 1), jnp.float32),   # running denom l
                pltpu.VMEM((num_heads, tq, D), jnp.float32),   # f32 accumulator
            ],
        ),
        compiler_params=pltpu.CompilerParams(
            dimension_semantics=("parallel", "parallel", "arbitrary"),
            vmem_limit_bytes=_vmem_limit(need)),
    )(qkv, qkv, qkv)


# ---------------------------------------------------------------------------
# Full Attention forward (matches the PyTorch module, with_qkv=True)
# ---------------------------------------------------------------------------
def attention_pallas(x, w_qkv, b_qkv, w_proj, b_proj, *, num_heads, scale=None,
                     compute_dtype=jnp.bfloat16):
    B, N, C = x.shape
    assert C % num_heads == 0
    D = C // num_heads
    if scale is None:
        scale = D ** (-0.5)
    out_dtype = x.dtype
    cdt = compute_dtype if compute_dtype is not None else x.dtype

    # Fold the softmax scale into the q columns of the qkv projection (one-time
    # (C, 3C) op) -> no per-element scaling of q or the score matrix in-kernel.
    w_qkv = w_qkv.astype(jnp.float32)
    w_qkv = jnp.concatenate([w_qkv[:, :C] * scale, w_qkv[:, C:]], axis=1)
    b_qkv = b_qkv.astype(jnp.float32)
    b_qkv = jnp.concatenate([b_qkv[:C] * scale, b_qkv[C:]])

    # bf16 (default) matmul operands; biases stay f32 (added to the f32 acc).
    xc = x.astype(cdt)
    w_qkv_c = w_qkv.astype(cdt)
    w_proj_c = w_proj.astype(cdt)
    b_proj_f = b_proj.astype(jnp.float32)

    # Pad the sequence axis once (multiple of 8 sublanes).  Padded keys are
    # masked to -inf in the attention kernel; padded rows are sliced off below.
    Np = _round_up(N, 8)
    if Np != N:
        xc = jnp.pad(xc, ((0, 0), (0, Np - N), (0, 0)))

    # qkv projection.  Output stays in the natural (B, Np, 3C) layout so the
    # attention kernel reads q/k/v straight out of it (no XLA transposes).
    qkv = linear_pallas(xc.reshape(B * Np, C), w_qkv_c, b_qkv, out_dtype=cdt)
    qkv = qkv.reshape(B, Np, 3 * C)                       # free reshape

    # Fused multi-head attention, output already head-merged in (B, Np, C).
    o = fused_mha_pallas(qkv, num_heads=num_heads, n_real=N)

    # Output projection (proj_drop p=0 -> identity).
    y = linear_pallas(o.reshape(B * Np, C), w_proj_c, b_proj_f, out_dtype=cdt)
    y = y.reshape(B, Np, C)
    if Np != N:
        y = y[:, :N]
    return y.astype(out_dtype)


# ---------------------------------------------------------------------------
# Pure-JAX reference for verification
# ---------------------------------------------------------------------------
def attention_reference(x, w_qkv, b_qkv, w_proj, b_proj, num_heads, scale):
    B, N, C = x.shape
    D = C // num_heads
    qkv = jnp.einsum("bnc,ck->bnk", x, w_qkv) + b_qkv
    qkv = qkv.reshape(B, N, 3, num_heads, D).transpose(2, 0, 3, 1, 4)
    q, k, v = qkv[0], qkv[1], qkv[2]                      # (B, H, N, D)
    attn = jnp.einsum("bhnd,bhmd->bhnm", q, k) * scale
    attn = jax.nn.softmax(attn, axis=-1)
    o = jnp.einsum("bhnm,bhmd->bhnd", attn, v)
    o = o.transpose(0, 2, 1, 3).reshape(B, N, C)
    return jnp.einsum("bnc,co->bno", o, w_proj) + b_proj


if __name__ == "__main__":
    key = jax.random.PRNGKey(0)
    # Small shapes: N=20 exercises the padding + key-masking path (Np=24).
    B, N, C = 2, 20, 128
    num_heads = 2
    D = C // num_heads
    scale = D ** (-0.5)

    kx, kq, kp, kb = jax.random.split(key, 4)
    x = jax.random.normal(kx, (B, N, C), dtype=jnp.float32)

    lim = 1.0 / math.sqrt(C)
    w_qkv = jax.random.uniform(kq, (C, 3 * C), minval=-lim, maxval=lim,
                               dtype=jnp.float32)
    b_qkv = jnp.zeros((3 * C,), dtype=jnp.float32)        # qkv_bias=False
    w_proj = jax.random.uniform(kp, (C, C), minval=-lim, maxval=lim,
                                dtype=jnp.float32)
    b_proj = jax.random.uniform(kb, (C,), minval=-lim, maxval=lim,
                                dtype=jnp.float32)

    y_ref = attention_reference(x, w_qkv, b_qkv, w_proj, b_proj,
                                num_heads, scale)

    # f32 matmul operands (tight check; approx reciprocal in the finalize).
    y32 = attention_pallas(x, w_qkv, b_qkv, w_proj, b_proj,
                           num_heads=num_heads, scale=scale, compute_dtype=None)
    y32 = jax.block_until_ready(y32)
    assert y32.shape == (B, N, C)
    assert jnp.allclose(y32, y_ref, atol=5e-3, rtol=5e-3), "f32 mismatch vs reference"

    # Default bf16 matmul operands (2x MXU rate, f32 accumulation) -> looser tol.
    ybf = attention_pallas(x, w_qkv, b_qkv, w_proj, b_proj,
                           num_heads=num_heads, scale=scale,
                           compute_dtype=jnp.bfloat16)
    ybf = jax.block_until_ready(ybf)
    assert ybf.shape == (B, N, C)
    assert jnp.allclose(ybf, y_ref, atol=3e-2, rtol=3e-2), "bf16 mismatch vs reference"

    print("KERNEL_OK")
</pallas_src>

<mosaic_0001>
module attributes {stable_mosaic.version = 11 : i64} {
  func.func @_linear_kernel(%arg0: i32, %arg1: i32, %arg2: memref<48x128xf32, #tpu.memory_space<vmem>>, %arg3: memref<128x384xf32, #tpu.memory_space<vmem>>, %arg4: memref<1x384xf32, #tpu.memory_space<vmem>>, %arg5: memref<48x384xf32, #tpu.memory_space<vmem>>) attributes {dimension_semantics = [#tpu.dimension_semantics<parallel>, #tpu.dimension_semantics<parallel>], iteration_bounds = array<i64: 1, 1>, scalar_prefetch = 0 : i64, scratch_operands = 0 : i64, tpu.core_type = #tpu.core_type<tc>, window_params = [{transform_indices = @transform_0, window_bounds = array<i64: 48, 128>}, {transform_indices = @transform_1, window_bounds = array<i64: 128, 384>}, {transform_indices = @transform_2, window_bounds = array<i64: 1, 384>}, {transform_indices = @transform_3, window_bounds = array<i64: 48, 384>}]} {
    %c0 = arith.constant 0 : index
    %c0_0 = arith.constant 0 : index
    %0 = vector.load %arg2[%c0, %c0_0] : memref<48x128xf32, #tpu.memory_space<vmem>>, vector<48x128xf32>
    %c0_1 = arith.constant 0 : index
    %c0_2 = arith.constant 0 : index
    %1 = vector.load %arg3[%c0_1, %c0_2] : memref<128x384xf32, #tpu.memory_space<vmem>>, vector<128x384xf32>
    %cst = arith.constant dense<0.000000e+00> : vector<48x384xf32>
    %2 = tpu.matmul %0, %1, %cst {dimension_numbers = #tpu.dot_dimension_numbers<[1], [0], [0], [1], [0, 0, 1, 1], [], []>} : vector<48x128xf32>, vector<128x384xf32>, vector<48x384xf32> -> vector<48x384xf32>
    %c0_3 = arith.constant 0 : index
    %c0_4 = arith.constant 0 : index
    %3 = vector.load %arg4[%c0_3, %c0_4] : memref<1x384xf32, #tpu.memory_space<vmem>>, vector<1x384xf32>
    %4 = vector.broadcast %3 : vector<1x384xf32> to vector<48x384xf32>
    %5 = arith.addf %2, %4 : vector<48x384xf32>
    %c0_5 = arith.constant 0 : index
    %c0_6 = arith.constant 0 : index
    %6 = vector.load %arg5[%c0_5, %c0_6] : memref<48x384xf32, #tpu.memory_space<vmem>>, vector<48x384xf32>
    tpu.vector_store %arg5[%c0_5, %c0_6], %5 {strides = array<i32>} : memref<48x384xf32, #tpu.memory_space<vmem>>, vector<48x384xf32>,
    return
  }
  func.func @transform_0(%arg0: i32, %arg1: i32) -> (i32, i32) {
    %c0_i32 = arith.constant 0 : i32
    %c0_i32_0 = arith.constant 0 : i32
    return %arg1, %c0_i32 : i32, i32
  }
  func.func @transform_1(%arg0: i32, %arg1: i32) -> (i32, i32) {
    %c0_i32 = arith.constant 0 : i32
    %c0_i32_0 = arith.constant 0 : i32
    return %c0_i32, %arg0 : i32, i32
  }
  func.func @transform_2(%arg0: i32, %arg1: i32) -> (i32, i32) {
    %c0_i32 = arith.constant 0 : i32
    %c0_i32_0 = arith.constant 0 : i32
    return %c0_i32, %arg0 : i32, i32
  }
  func.func @transform_3(%arg0: i32, %arg1: i32) -> (i32, i32) {
    %c0_i32 = arith.constant 0 : i32
    return %arg1, %arg0 : i32, i32
  }
}

</mosaic_0001>

<bundles_post_ra>
// kernel: tpu_custom_call.1
= control target key start
LH: loop header
LB: loop body
LE: loop exit
PB: predicated region body
PF: predicated region fallthrough
CT: control target
= control target key end

     0   :  { %8 = vsyncpa [#allocation3], 0  ;;  %s632_s0 = inlined_call_operand.hbm [shape: f32[48,128], index: 0, kind: input, shape index: {}]   ;;  %s633_s1 = inlined_call_operand.hbm [shape: f32[128,384], index: 1, kind: input, shape index: {}]   ;;  %s634_s2 = inlined_call_operand.vmem [shape: f32[1,384], index: 2, kind: input, shape index: {}]   ;;  %s635_s3 = inlined_call_operand.hbm [shape: f32[48,384], index: 3, kind: output, shape index: {}]  }
   0x1   :  { %9 = vsyncpa [#allocation6], 0 }
   0x2   :  { %10 = vsyncpa [#allocation4], 0  ;;  %s553_s12 = smov [#allocation2]   ;;  %s481_s16 = scalar_lea.hbm %s632_s0, 768 }
   0x3   :  { %s16_s13 = sshll.u32 %s553_s12, 4  ;;  %p482_p0 = scmp.ne.s32.totalorder %s632_s0, %s481_s16  ;;  %s17_s13 = int_to_ptr.vmem [resolvable:$true] %s16_s13 }
   0x4   :  { %p485_p1 = scmp.lt.u32.totalorder %s481_s16, %s632_s0 }
   0x6   :  { %p487_p2 = pnand %p485_p1, %p482_p0 }
   0x8   :  { %490 = shalt.err (!%p487_p2)
}
   0x9   :  { %s491_s21 = scalar_lea.vmem %s17_s13, 768  ;;  %p496_p4 = scmp.lt.s32.totalorder %s17_s13, %s17_s13 }
   0xa   :  { %p492_p3 = scmp.ne.s32.totalorder %s17_s13, %s491_s21  ;;  %p497_p5 = scmp.lt.s32.totalorder %s491_s21, %s491_s21 }
   0xc   :  { %p498_p6 = por %p497_p5, %p496_p4 }
   0xe   :  { %p499_p7 = pnand %p498_p6, %p492_p3 }
  0x10   :  { %502 = shalt.err (!%p499_p7)
}
  0x11   :  { %s554_s22 = smov 128   ;;  %s555_s23 = smov 8  }
  0x12   :  { %22 = dma.hbm_to_vmem [thread:$0]  %s632_s0, 768, %s17_s13, [#allocation3], %s554_s22, %s554_s22, %s555_s23  }
  0x13   :  { %s556_s26 = smov [#allocation5]   ;;  %s503_s30 = scalar_lea.hbm %s633_s1, 6144 }
  0x14   :  { %s28_s27 = sshll.u32 %s556_s26, 4  ;;  %p504_p8 = scmp.ne.s32.totalorder %s633_s1, %s503_s30  ;;  %s29_s27 = int_to_ptr.vmem [resolvable:$true] %s28_s27 }
  0x15   :  { %p507_p9 = scmp.lt.u32.totalorder %s503_s30, %s633_s1 }
  0x17   :  { %p509_p10 = pnand %p507_p9, %p504_p8 }
  0x19   :  { %512 = shalt.err (!%p509_p10)
}
  0x1a   :  { %s513_s8 = scalar_lea.vmem %s29_s27, 6144  ;;  %p518_p12 = scmp.lt.s32.totalorder %s29_s27, %s29_s27 }
  0x1b   :  { %p514_p11 = scmp.ne.s32.totalorder %s29_s27, %s513_s8  ;;  %p519_p13 = scmp.lt.s32.totalorder %s513_s8, %s513_s8 }
  0x1d   :  { %p520_p0 = por %p519_p13, %p518_p12 }
  0x1f   :  { %p521_p1 = pnand %p520_p0, %p514_p11 }
  0x21   :  { %524 = shalt.err (!%p521_p1)
}
  0x22   :  { %s557_s0 = smov 384   ;;  %s558_s9 = smov 24  }
  0x23   :  { %34 = dma.hbm_to_vmem [thread:$0]  %s633_s1, 6144, %s29_s27, [#allocation6], %s557_s0, %s557_s0, %s558_s9  }
  0x24   :  { %547 = dma.done.wait [#allocation3], 768  }
  0x25   :  { %548 = vsyncadd [#allocation3], 4294966528 }
  0x26   :  { %549 = dma.done.wait [#allocation6], 6144  }
  0x27   :  { %550 = vsyncadd [#allocation6], 4294961152  ;;  %v559_v0 = vmov 0.0   ;;  %v50_v1 = vld [vmem:[#allocation5 + $0x8] sm:$0xff]  ;;  %v53_v2 = vld [vmem:[#allocation5 + $0x20] sm:$0xff] }
  0x28   :  { %178 = vmatprep.mubr.f32.mxu0 %v559_v0  ;;  %v49_v3 = vld [vmem:[#allocation5] sm:$0xff]  ;;  %v409_v4 = vpack.c.bf16 %v53_v2, %v50_v1  ;;  %v52_v5 = vld [vmem:[#allocation5 + $0x18] sm:$0xff]  ;;  %v59_v7 = vld [vmem:[#allocation5 + $0x50] sm:$0xff] }
  0x29   :  { %v56_v6 = vld [vmem:[#allocation5 + $0x38] sm:$0xff]  ;;  %v411_v8 = vpack.c.bf16 %v52_v5, %v49_v3  ;;  %v55_v10 = vld [vmem:[#allocation5 + $0x30] sm:$0xff]  ;;  %v58_v11 = vld [vmem:[#allocation5 + $0x48] sm:$0xff] }
  0x2a   :  { %v413_v9 = vpack.c.bf16 %v59_v7, %v56_v6  ;;  %v62_v12 = vld [vmem:[#allocation5 + $0x68] sm:$0xff]  ;;  %410 = vmatprep.subr.bf16.mxu0 %v409_v4  ;;  %v65_v13 = vld [vmem:[#allocation5 + $0x80] sm:$0xff]  ;;  %v415_v14 = vpack.c.bf16 %v58_v11, %v55_v10  ;;  %v51_v15 = vld [vmem:[#allocation5 + $0x10] sm:$0xff] }
  0x2b   :  { %412 = vmatpush1.bf16.msra.mxu0 %v411_v8  ;;  %v54_v16 = vld [vmem:[#allocation5 + $0x28] sm:$0xff]  ;;  %v417_v17 = vpack.c.bf16 %v65_v13, %v62_v12  ;;  %v61_v18 = vld [vmem:[#allocation5 + $0x60] sm:$0xff]  ;;  %v64_v19 = vld [vmem:[#allocation5 + $0x78] sm:$0xff] }
  0x2c   :  { %414 = vmatprep.subr.bf16.mxu0 %v413_v9  ;;  %v441_v20 = vpack.c.bf16 %v54_v16, %v51_v15  ;;  %v68_v21 = vld [vmem:[#allocation5 + $0x98] sm:$0xff]  ;;  %v71_v22 = vld [vmem:[#allocation5 + $0xb0] sm:$0xff]  ;;  %v57_v23 = vld [vmem:[#allocation5 + $0x40] sm:$0xff]  ;;  %v419_v26 = vpack.c.bf16 %v64_v19, %v61_v18  ;;  %v99_v16 = vlaneseq }
  0x2d   :  { %v60_v24 = vld [vmem:[#allocation5 + $0x58] sm:$0xff]  ;;  %v63_v27 = vld [vmem:[#allocation5 + $0x70] sm:$0xff]  ;;  %v66_v28 = vld [vmem:[#allocation5 + $0x88] sm:$0xff]  ;;  %v421_v29 = vpack.c.bf16 %v71_v22, %v68_v21 }
  0x2e   :  { %442 = vmatprep.subr.bf16.mxu1 %v441_v20  ;;  %v445_v25 = vpack.c.bf16 %v60_v24, %v57_v23  ;;  %v67_v30 = vld [vmem:[#allocation5 + $0x90] sm:$0xff]  ;;  %v70_v31 = vld [vmem:[#allocation5 + $0xa8] sm:$0xff]  ;;  %v449_v33 = vpack.c.bf16 %v66_v28, %v63_v27  ;;  %v77_v34 = vld [vmem:[#allocation5 + $0xe0] sm:$0xff] }
  0x2f   :  { %416 = vmatpush1.bf16.msra.mxu0 %v415_v14  ;;  %444 = vmatpush3.bf16.msra.mxu1 %v441_v20  ;;  %v74_v32 = vld [vmem:[#allocation5 + $0xc8] sm:$0xff]  ;;  %v69_v35 = vld [vmem:[#allocation5 + $0xa0] sm:$0xff]  ;;  %v72_v36 = vld [vmem:[#allocation5 + $0xb8] sm:$0xff]  ;;  %v423_v37 = vpack.c.bf16 %v70_v31, %v67_v30 }
  0x30   :  { %418 = vmatprep.subr.bf16.mxu0 %v417_v17  ;;  %446 = vmatprep.subr.bf16.mxu1 %v445_v25  ;;  %v73_v38 = vld [vmem:[#allocation5 + $0xc0] sm:$0xff]  ;;  %v425_v39 = vpack.c.bf16 %v77_v34, %v74_v32  ;;  %v76_v40 = vld [vmem:[#allocation5 + $0xd8] sm:$0xff]  ;;  %v83_v42 = vld [vmem:[#allocation5 + $0x110] sm:$0xff]  ;;  %v453_v43 = vpack.c.bf16 %v72_v36, %v69_v35  ;;  %v100_v17 = vshrl.u32 %v99_v16, 7 }
  0x31   :  { %v80_v41 = vld [vmem:[#allocation5 + $0xf8] sm:$0xff]  ;;  %v75_v44 = vld [vmem:[#allocation5 + $0xd0] sm:$0xff]  ;;  %v78_v45 = vld [vmem:[#allocation5 + $0xe8] sm:$0xff]  ;;  %v427_v47 = vpack.c.bf16 %v76_v40, %v73_v38 }
  0x32   :  { %v43_v46 = vld [vmem:[#allocation2] sm:$0xff]  ;;  %v429_v48 = vpack.c.bf16 %v83_v42, %v80_v41  ;;  %v82_v50 = vld [vmem:[#allocation5 + $0x108] sm:$0xff]  ;;  %v457_v52 = vpack.c.bf16 %v78_v45, %v75_v44  ;;  %v89_v53 = vld [vmem:[#allocation5 + $0x140] sm:$0xff]  ;;  %v101_v18 = vsub.s32 0, %v100_v17  ;;  %v105_v20 = vsub.s32 1, %v100_v17 }
  0x33   :  { %420 = vmatpush1.bf16.msra.mxu0 %v419_v26  ;;  %448 = vmatpush3.bf16.msra.mxu1 %v445_v25  ;;  %v79_v49 = vld [vmem:[#allocation5 + $0xf0] sm:$0xff]  ;;  %v86_v51 = vld [vmem:[#allocation5 + $0x128] sm:$0xff]  ;;  %v81_v54 = vld [vmem:[#allocation5 + $0x100] sm:$0xff]  ;;  %v109_v22 = vsub.s32 2, %v100_v17 }
  0x34   :  { %422 = vmatprep.subr.bf16.mxu0 %v421_v29  ;;  %450 = vmatprep.subr.bf16.mxu1 %v449_v33  ;;  %v84_v55 = vld [vmem:[#allocation5 + $0x118] sm:$0xff]  ;;  %v431_v56 = vpack.c.bf16 %v82_v50, %v79_v49  ;;  %v433_v57 = vpack.c.bf16 %v89_v53, %v86_v51  ;;  %v85_v58 = vld [vmem:[#allocation5 + $0x120] sm:$0xff]  ;;  %v95_v62 = vld [vmem:[#allocation5 + $0x170] sm:$0xff] }
  0x35   :  { %400 = vmatprep.mubr.f32.mxu1 %v43_v46  ;;  %v88_v59 = vld [vmem:[#allocation5 + $0x138] sm:$0xff]  ;;  %v461_v61 = vpack.c.bf16 %v84_v55, %v81_v54  ;;  %v87_v63 = vld [vmem:[#allocation5 + $0x130] sm:$0xff]  ;;  %v90_v1 = vld [vmem:[#allocation5 + $0x148] sm:$0xff] }
  0x36   :  { %v92_v60 = vld [vmem:[#allocation5 + $0x158] sm:$0xff]  ;;  %v435_v2 = vpack.c.bf16 %v88_v59, %v85_v58  ;;  %v91_v4 = vld [vmem:[#allocation5 + $0x150] sm:$0xff]  ;;  %v94_v5 = vld [vmem:[#allocation5 + $0x168] sm:$0xff]  ;;  %v465_v6 = vpack.c.bf16 %v90_v1, %v87_v63 }
  0x37   :  { %424 = vmatpush1.bf16.msra.mxu0 %v423_v37  ;;  %452 = vmatpush3.bf16.msra.mxu1 %v449_v33  ;;  %v437_v3 = vpack.c.bf16 %v95_v62, %v92_v60  ;;  %v93_v7 = vld [vmem:[#allocation5 + $0x160] sm:$0xff]  ;;  %v96_v8 = vld [vmem:[#allocation5 + $0x178] sm:$0xff]  ;;  %v439_v9 = vpack.c.bf16 %v94_v5, %v91_v4  ;;  %v46_v13 = vld [vmem:[#allocation2 + $0x18] sm:$0xff] }
  0x38   :  { %426 = vmatprep.subr.bf16.mxu0 %v425_v39  ;;  %454 = vmatprep.subr.bf16.mxu1 %v453_v43  ;;  %v469_v10 = vpack.c.bf16 %v96_v8, %v93_v7  ;;  %v44_v11 = vld [vmem:[#allocation2 + $0x8] sm:$0xff]  ;;  %v45_v12 = vld [vmem:[#allocation2 + $0x10] sm:$0xff]  ;;  %v47_v14 = vld [vmem:[#allocation2 + $0x20] sm:$0xff] }
  0x39   :  { %v48_v15 = vld [vmem:[#allocation2 + $0x28] sm:$0xff]  ;;  %v97_v19 = vld [vmem:[%s634_s2] sm:$0x7]  ;;  %s560_s2 = smov [#allocation7]  }
  0x3a   :  { %v102_v21 = vrot.slane %v97_v19, %v101_v18  ;;  %v106_v23 = vrot.slane %v97_v19, %v105_v20  ;;  %v110_v27 = vrot.slane %v97_v19, %v109_v22  ;;  %s333_s13 = sshll.u32 %s560_s2, 4  ;;  %s334_s13 = int_to_ptr.vmem [resolvable:$true] %s333_s13 }
  0x3b   :  { %428 = vmatpush1.bf16.msra.mxu0 %v427_v47  ;;  %456 = vmatpush3.bf16.msra.mxu1 %v453_v43  ;;  %s525_s14 = scalar_lea.vmem %s334_s13, 2304  ;;  %p530_p3 = scmp.lt.s32.totalorder %s334_s13, %s334_s13 }
  0x3c   :  { %430 = vmatprep.subr.bf16.mxu0 %v429_v48  ;;  %458 = vmatprep.subr.bf16.mxu1 %v457_v52  ;;  %p526_p2 = scmp.ne.s32.totalorder %s334_s13, %s525_s14  ;;  %p531_p4 = scmp.lt.s32.totalorder %s525_s14, %s525_s14 }
  0x3e   :  { %p532_p5 = por %p531_p4, %p530_p3 }
  0x3f   :  { %432 = vmatpush1.bf16.msra.mxu0 %v431_v56  ;;  %460 = vmatpush3.bf16.msra.mxu1 %v457_v52 }
  0x40   :  { %434 = vmatprep.subr.bf16.mxu0 %v433_v57  ;;  %462 = vmatprep.subr.bf16.mxu1 %v461_v61  ;;  %p533_p6 = pnand %p532_p5, %p526_p2 }
  0x43   :  { %436 = vmatpush1.bf16.msra.mxu0 %v435_v2  ;;  %464 = vmatpush3.bf16.msra.mxu1 %v461_v61 }
  0x44   :  { %438 = vmatprep.subr.bf16.mxu0 %v437_v3  ;;  %466 = vmatprep.subr.bf16.mxu1 %v465_v6 }
  0x47   :  { %440 = vmatpush1.bf16.msra.mxu0 %v439_v9  ;;  %468 = vmatpush3.bf16.msra.mxu1 %v465_v6 }
  0x48   :  { %470 = vmatprep.subr.bf16.mxu1 %v469_v10 }
  0x4a   :  { %179 = vmatmul.mubr.f32.vlgmr.msra.gmra.mrb[0].mxu0 %v43_v46 }
  0x4b   :  { %184 = vmatprep.mubr.f32.mxu0 %v559_v0  ;;  %472 = vmatpush3.bf16.msra.mxu1 %v469_v10 }
  0x4e   :  { %185 = vmatmul.mubr.f32.gmra.mrb[2].mxu0 %v44_v11  ;;  %401 = vmatmul.mubr.f32.vlgmr.msra.gmra.mrb[0].mxu1 %v44_v11 }
  0x4f   :  { %190 = vmatprep.mubr.f32.mxu0 %v559_v0  ;;  %403 = vmatprep.mubr.f32.mxu1 %v45_v12 }
  0x52   :  { %191 = vmatmul.mubr.f32.gmra.mrb[4].mxu0 %v45_v12  ;;  %404 = vmatmul.mubr.f32.gmra.mrb[2].mxu1 %v46_v13 }
  0x53   :  { %196 = vmatprep.mubr.f32.mxu0 %v559_v0  ;;  %406 = vmatprep.mubr.f32.mxu1 %v47_v14 }
  0x56   :  { %197 = vmatmul.mubr.f32.gmra.mrb[6].mxu0 %v46_v13  ;;  %407 = vmatmul.mubr.f32.gmra.mrb[4].mxu1 %v48_v15 }
  0x57   :  { %202 = vmatprep.mubr.f32.mxu0 %v559_v0 }
  0x5a   :  { %203 = vmatmul.mubr.f32.gmra.mrb[8].mxu0 %v47_v14 }
  0x5b   :  { %208 = vmatprep.mubr.f32.mxu0 %v559_v0 }
  0x5e   :  { %209 = vmatmul.mubr.f32.gmra.mrb[10].mxu0 %v48_v15 }
 0x11d   :  { %v180_v24 = vpop.f32.mrb[0].mxu0 }
 0x11e   :  { %v181_v25 = vadd.f32 %v180_v24, %v102_v21  ;;  %v182_v26 = vpop.f32.mrb[1].mxu0 }
 0x11f   :  { %v183_v28 = vadd.f32 %v182_v26, %v106_v23 }
 0x120   :  { %310 = vst [vmem:[#allocation7] sm:$0xff] %v181_v25 }
 0x121   :  { %311 = vst [vmem:[#allocation7 + $0x8] sm:$0xff] %v183_v28  ;;  %v186_v0 = vpop.f32.mrb[2].mxu0  ;;  %v402_v29 = vpop.f32.mrb[0].mxu1 }
 0x122   :  { %v187_v30 = vadd.f32 %v186_v0, %v102_v21  ;;  %v188_v31 = vpop.f32.mrb[3].mxu0  ;;  %v287_v32 = vadd.f32 %v402_v29, %v110_v27  ;;  %v281_v33 = vpop.f32.mrb[1].mxu1 }
 0x123   :  { %v189_v34 = vadd.f32 %v188_v31, %v106_v23  ;;  %v282_v35 = vadd.f32 %v281_v33, %v110_v27 }
 0x124   :  { %313 = vst [vmem:[#allocation7 + $0x18] sm:$0xff] %v187_v30  ;;  %315 = vst [vmem:[#allocation7 + $0x28] sm:$0xff] %v287_v32 }
 0x125   :  { %314 = vst [vmem:[#allocation7 + $0x20] sm:$0xff] %v189_v34  ;;  %v192_v36 = vpop.f32.mrb[4].mxu0  ;;  %312 = vst [vmem:[#allocation7 + $0x10] sm:$0xff] %v282_v35  ;;  %v405_v37 = vpop.f32.mrb[2].mxu1 }
 0x126   :  { %v193_v38 = vadd.f32 %v192_v36, %v102_v21  ;;  %v194_v39 = vpop.f32.mrb[5].mxu0  ;;  %v297_v40 = vadd.f32 %v405_v37, %v110_v27  ;;  %v291_v41 = vpop.f32.mrb[3].mxu1 }
 0x127   :  { %v195_v42 = vadd.f32 %v194_v39, %v106_v23  ;;  %v292_v43 = vadd.f32 %v291_v41, %v110_v27 }
 0x128   :  { %316 = vst [vmem:[#allocation7 + $0x30] sm:$0xff] %v193_v38  ;;  %321 = vst [vmem:[#allocation7 + $0x58] sm:$0xff] %v297_v40 }
 0x129   :  { %317 = vst [vmem:[#allocation7 + $0x38] sm:$0xff] %v195_v42  ;;  %v198_v44 = vpop.f32.mrb[6].mxu0  ;;  %318 = vst [vmem:[#allocation7 + $0x40] sm:$0xff] %v292_v43  ;;  %v408_v45 = vpop.f32.mrb[4].mxu1 }
 0x12a   :  { %v199_v46 = vadd.f32 %v198_v44, %v102_v21  ;;  %v200_v47 = vpop.f32.mrb[7].mxu0  ;;  %v307_v48 = vadd.f32 %v408_v45, %v110_v27  ;;  %v301_v49 = vpop.f32.mrb[5].mxu1 }
 0x12b   :  { %v201_v50 = vadd.f32 %v200_v47, %v106_v23  ;;  %v302_v51 = vadd.f32 %v301_v49, %v110_v27 }
 0x12c   :  { %319 = vst [vmem:[#allocation7 + $0x48] sm:$0xff] %v199_v46  ;;  %327 = vst [vmem:[#allocation7 + $0x88] sm:$0xff] %v307_v48 }
 0x12d   :  { %320 = vst [vmem:[#allocation7 + $0x50] sm:$0xff] %v201_v50  ;;  %v204_v52 = vpop.f32.mrb[8].mxu0  ;;  %324 = vst [vmem:[#allocation7 + $0x70] sm:$0xff] %v302_v51 }
 0x12e   :  { %v205_v53 = vadd.f32 %v204_v52, %v102_v21  ;;  %v206_v54 = vpop.f32.mrb[9].mxu0 }
 0x12f   :  { %v207_v55 = vadd.f32 %v206_v54, %v106_v23 }
 0x130   :  { %322 = vst [vmem:[#allocation7 + $0x60] sm:$0xff] %v205_v53 }
 0x131   :  { %323 = vst [vmem:[#allocation7 + $0x68] sm:$0xff] %v207_v55  ;;  %v210_v56 = vpop.f32.mrb[10].mxu0 }
 0x132   :  { %v211_v57 = vadd.f32 %v210_v56, %v102_v21  ;;  %v212_v58 = vpop.f32.mrb[11].mxu0 }
 0x133   :  { %v213_v59 = vadd.f32 %v212_v58, %v106_v23 }
 0x134   :  { %325 = vst [vmem:[#allocation7 + $0x78] sm:$0xff] %v211_v57 }
 0x135   :  { %326 = vst [vmem:[#allocation7 + $0x80] sm:$0xff] %v213_v59 }
 0x136   :  { %536 = shalt.err (!%p533_p6)
}
 0x137   :  { %s537_s17 = scalar_lea.hbm %s635_s3, 2304 }
 0x138   :  { %p538_p7 = scmp.ne.s32.totalorder %s635_s3, %s537_s17  ;;  %p541_p8 = scmp.lt.u32.totalorder %s537_s17, %s635_s3 }
 0x13a   :  { %p543_p9 = pnand %p541_p8, %p538_p7 }
 0x13c   :  { %546 = shalt.err (!%p543_p9)
}
 0x13d   :  { %339 = dma.vmem_to_hbm [thread:$0]  %s334_s13, 2304, %s635_s3, [#allocation4], %s557_s0, %s557_s0, %s558_s9  }
 0x13e   :  { %551 = dma.done.wait [#allocation4], 2304  }
 0x13f   :  { %552 = vsyncadd [#allocation4], 4294964992 }
 0x140   :  { %343 = vsyncpa [#allocation3], 1 }
 0x141   :  { %344 = vsyncpa [#allocation6], 1 }
 0x142   :  { %345 = vsyncpa [#allocation4], 1 }

</bundles_post_ra>
